<compile_context>
chip_gen: v6e
topology: v6e:2x2x1
jax: 0.10.0
libtpu: 0.0.40
codegen_flags: <defaults>
</compile_context>

<pallas_src>
import functools
import numpy as np
import jax
import jax.numpy as jnp
from jax import lax
from jax.experimental import pallas as pl
from jax.experimental.pallas import tpu as pltpu


def _scft_kernel(inv_scale, channels, ref_ref, sk_ref, wkv_ref, wq_ref,
                 out_ref, q_ref, k_ref):
    """One grid step = BB batch elements, all tensors channel-major (C, HW)."""
    C = channels
    bb = ref_ref.shape[0]
    wkv = wkv_ref[...]          # (2C, C)  fused k|v weight (PyTorch layout)
    wq = wq_ref[...]            # (C, C)

    # TODO(synk): for large H, W the (HW, HW) score tile should be computed with
    # a flash-style online-softmax over KV tiles; at HW<=64 it is ~16 KB so the
    # dense form is used.
    for b in range(bb):
        x_ref = ref_ref[b]      # (C, HW) reference features, channel-major
        x_sk = sk_ref[b]        # (C, HW) sketch features, channel-major

        # Fused projections on the MXU (channel-major: y_c = W @ x_c).
        kv_c = jnp.dot(wkv, x_ref, preferred_element_type=jnp.float32)   # (2C, HW)
        k_c = kv_c[:C, :]                                                # (C, HW)
        v_c = kv_c[C:, :]                                                # (C, HW)
        q_c = jnp.dot(wq, x_sk, preferred_element_type=jnp.float32)      # (C, HW)

        # scores s[n, m] = sum_c q_c[c, n] * k_c[c, m]  (no explicit transpose)
        s = lax.dot_general(q_c, k_c, (((0,), (0,)), ((), ())),
                            preferred_element_type=jnp.float32)          # (HW, HW)

        # softmax(-1) then / scale (matches the PyTorch module), with the scale
        # folded into the approx-reciprocal broadcast (EUP slot, not VALU).
        m = jnp.max(s, axis=-1, keepdims=True)
        p = jnp.exp(s - m)
        l = jnp.sum(p, axis=-1, keepdims=True)
        attn = p * (pl.reciprocal(l, approx=True) * inv_scale)           # (HW, HW)

        # heat_c = v_c @ attn^T  -> channel-major heat (C, HW)
        heat_c = lax.dot_general(v_c, attn, (((1,), (1,)), ((), ())),
                                 preferred_element_type=jnp.float32)     # (C, HW)

        out_ref[b] = x_sk + heat_c     # lane-dense (HW-wide) stores
        q_ref[b] = q_c
        k_ref[b] = k_c


def scft_forward(ref_nchw, sketch_nchw, w_kv, w_q):
    """Pallas implementation of SCFT.forward for 4D NCHW inputs.

    w_kv: (2C, C) spectral-normalized kv weight, w_q: (C, C) spectral-normalized
    q weight (PyTorch nn.Linear layout: (out_features, in_features)).
    Returns (out NCHW, [q, k]) like the PyTorch module (q, k token-major).
    """
    B, C, H, W = ref_nchw.shape
    HW = H * W
    inv_scale = float(1.0 / np.sqrt(C))

    # Channel-major (B, C, HW): a pure reshape of NCHW, no transpose needed.
    ref_c = ref_nchw.reshape(B, C, HW)
    sk_c = sketch_nchw.reshape(B, C, HW)

    # Split the batch over (up to) two grid steps so both v7x TensorCores are
    # used; each step handles B // G elements (work per step grows with B).
    G = 2 if (B >= 2 and B % 2 == 0) else 1
    BB = B // G

    kernel = functools.partial(_scft_kernel, inv_scale, C)

    tok_spec = pl.BlockSpec((BB, C, HW), lambda g: (g, 0, 0))
    wkv_spec = pl.BlockSpec((2 * C, C), lambda g: (0, 0))
    wq_spec = pl.BlockSpec((C, C), lambda g: (0, 0))

    out_c, q_c, k_c = pl.pallas_call(
        kernel,
        out_shape=(
            jax.ShapeDtypeStruct((B, C, HW), jnp.float32),
            jax.ShapeDtypeStruct((B, C, HW), jnp.float32),
            jax.ShapeDtypeStruct((B, C, HW), jnp.float32),
        ),
        grid_spec=pltpu.PrefetchScalarGridSpec(
            num_scalar_prefetch=0,
            grid=(G,),
            in_specs=[tok_spec, tok_spec, wkv_spec, wq_spec],
            out_specs=[tok_spec, tok_spec, tok_spec],
        ),
        compiler_params=pltpu.CompilerParams(
            dimension_semantics=("parallel",)),
    )(ref_c, sk_c, w_kv, w_q)

    # Main output is already channel-major NCHW (module assumes H == W).
    out_nchw = out_c.reshape(B, C, H, W)
    # Module returns q, k token-major (B, HW, C): small aux-output transposes.
    q = jnp.transpose(q_c, (0, 2, 1))
    k = jnp.transpose(k_c, (0, 2, 1))
    return out_nchw, [q, k]


def scft_reference(ref_nchw, sketch_nchw, w_kv, w_q):
    """Pure-JAX reference mirroring the PyTorch forward."""
    B, C, H, W = ref_nchw.shape
    HW = H * W
    scale = np.sqrt(C)
    ref_t = jnp.transpose(ref_nchw.reshape(B, C, HW), (0, 2, 1))
    sk_t = jnp.transpose(sketch_nchw.reshape(B, C, HW), (0, 2, 1))
    kv = jnp.einsum('bnc,dc->bnd', ref_t, w_kv).reshape(B, HW, 2, C)
    k = kv[:, :, 0, :]
    v = kv[:, :, 1, :]
    q = jnp.einsum('bnc,dc->bnd', sk_t, w_q)
    attn = jnp.einsum('bnc,bmc->bnm', q, k)
    attn = jax.nn.softmax(attn, axis=-1) / scale
    heat = jnp.einsum('bnm,bmc->bnc', attn, v)
    out = sk_t + heat
    out = jnp.transpose(out, (0, 2, 1)).reshape(B, C, H, W)
    return out, [q, k]


if __name__ == "__main__":
    key = jax.random.PRNGKey(0)
    B, C, H = 2, 32, 8  # channels=32, 8x8 spatial -> HW=64
    k1, k2, k3, k4 = jax.random.split(key, 4)

    ref = jax.random.normal(k1, (B, C, H, H), dtype=jnp.float32)
    sketch = jax.random.normal(k2, (B, C, H, H), dtype=jnp.float32)

    # Deterministic Linear-style init (uniform in +-1/sqrt(fan_in)), then
    # spectral normalization (sn=True in the module).
    bound = 1.0 / np.sqrt(C)
    w_kv_raw = jax.random.uniform(k3, (2 * C, C), minval=-bound, maxval=bound,
                                  dtype=jnp.float32)
    w_q_raw = jax.random.uniform(k4, (C, C), minval=-bound, maxval=bound,
                                 dtype=jnp.float32)

    # TODO(synk): PyTorch spectral_norm uses a one-step power-iteration estimate
    # of sigma per forward; here we normalize by the exact largest singular value.
    def spectral_normalize(w):
        sigma = np.linalg.svd(np.asarray(w), compute_uv=False)[0]
        return (w / sigma).astype(jnp.float32)

    w_kv = spectral_normalize(w_kv_raw)
    w_q = spectral_normalize(w_q_raw)

    out, (q, k_out) = scft_forward(ref, sketch, w_kv, w_q)
    jax.block_until_ready(out)

    out_r, (q_r, k_r) = scft_reference(ref, sketch, w_kv, w_q)
    np.testing.assert_allclose(np.asarray(out), np.asarray(out_r), rtol=1e-2, atol=1e-2)
    np.testing.assert_allclose(np.asarray(q), np.asarray(q_r), rtol=1e-2, atol=1e-2)
    np.testing.assert_allclose(np.asarray(k_out), np.asarray(k_r), rtol=1e-2, atol=1e-2)

    print("KERNEL_OK")
</pallas_src>

<mosaic_0001>
module attributes {stable_mosaic.version = 11 : i64} {
  func.func @_scft_kernel(%arg0: i32, %arg1: memref<1x32x64xf32, #tpu.memory_space<vmem>>, %arg2: memref<1x32x64xf32, #tpu.memory_space<vmem>>, %arg3: memref<64x32xf32, #tpu.memory_space<vmem>>, %arg4: memref<32x32xf32, #tpu.memory_space<vmem>>, %arg5: memref<1x32x64xf32, #tpu.memory_space<vmem>>, %arg6: memref<1x32x64xf32, #tpu.memory_space<vmem>>, %arg7: memref<1x32x64xf32, #tpu.memory_space<vmem>>) attributes {dimension_semantics = [#tpu.dimension_semantics<parallel>], iteration_bounds = array<i64: 2>, scalar_prefetch = 0 : i64, scratch_operands = 0 : i64, tpu.core_type = #tpu.core_type<tc>, window_params = [{transform_indices = @transform_0, window_bounds = array<i64: 1, 32, 64>}, {transform_indices = @transform_1, window_bounds = array<i64: 1, 32, 64>}, {pipeline_mode = #tpu.pipeline_mode<synchronous>, transform_indices = @transform_2, window_bounds = array<i64: 64, 32>}, {pipeline_mode = #tpu.pipeline_mode<synchronous>, transform_indices = @transform_3, window_bounds = array<i64: 32, 32>}, {transform_indices = @transform_4, window_bounds = array<i64: 1, 32, 64>}, {transform_indices = @transform_5, window_bounds = array<i64: 1, 32, 64>}, {transform_indices = @transform_6, window_bounds = array<i64: 1, 32, 64>}]} {
    %c0 = arith.constant 0 : index
    %c0_0 = arith.constant 0 : index
    %0 = vector.load %arg3[%c0, %c0_0] : memref<64x32xf32, #tpu.memory_space<vmem>>, vector<64x32xf32>
    %c0_1 = arith.constant 0 : index
    %c0_2 = arith.constant 0 : index
    %1 = vector.load %arg4[%c0_1, %c0_2] : memref<32x32xf32, #tpu.memory_space<vmem>>, vector<32x32xf32>
    %c0_3 = arith.constant 0 : index
    %c0_4 = arith.constant 0 : index
    %c0_5 = arith.constant 0 : index
    %2 = vector.load %arg1[%c0_3, %c0_4, %c0_5] : memref<1x32x64xf32, #tpu.memory_space<vmem>>, vector<1x32x64xf32>
    %3 = vector.shape_cast %2 : vector<1x32x64xf32> to vector<32x64xf32>
    %c0_6 = arith.constant 0 : index
    %c0_7 = arith.constant 0 : index
    %c0_8 = arith.constant 0 : index
    %4 = vector.load %arg2[%c0_6, %c0_7, %c0_8] : memref<1x32x64xf32, #tpu.memory_space<vmem>>, vector<1x32x64xf32>
    %5 = vector.shape_cast %4 : vector<1x32x64xf32> to vector<32x64xf32>
    %cst = arith.constant dense<0.000000e+00> : vector<64x64xf32>
    %6 = tpu.matmul %0, %3, %cst {dimension_numbers = #tpu.dot_dimension_numbers<[1], [0], [0], [1], [0, 0, 1, 1], [], []>} : vector<64x32xf32>, vector<32x64xf32>, vector<64x64xf32> -> vector<64x64xf32>
    %7 = vector.extract_strided_slice %6 {offsets = [0, 0], sizes = [32, 64], strides = [1, 1]} : vector<64x64xf32> to vector<32x64xf32>
    %8 = vector.extract_strided_slice %6 {offsets = [32, 0], sizes = [32, 64], strides = [1, 1]} : vector<64x64xf32> to vector<32x64xf32>
    %cst_9 = arith.constant dense<0.000000e+00> : vector<32x64xf32>
    %9 = tpu.matmul %1, %5, %cst_9 {dimension_numbers = #tpu.dot_dimension_numbers<[1], [0], [0], [1], [0, 0, 1, 1], [], []>} : vector<32x32xf32>, vector<32x64xf32>, vector<32x64xf32> -> vector<32x64xf32>
    %cst_10 = arith.constant dense<0.000000e+00> : vector<64x64xf32>
    %10 = tpu.matmul %9, %7, %cst_10 {dimension_numbers = #tpu.dot_dimension_numbers<[0], [0], [1], [1], [0, 1, 1, 1], [], []>} : vector<32x64xf32>, vector<32x64xf32>, vector<64x64xf32> -> vector<64x64xf32>
    %cst_11 = arith.constant dense<0xFF800000> : vector<64xf32>
    %11 = vector.multi_reduction <maximumf>, %10, %cst_11 [1] : vector<64x64xf32> to vector<64xf32>
    %12 = vector.shape_cast %11 : vector<64xf32> to vector<64x1xf32>
    %13 = vector.broadcast %12 : vector<64x1xf32> to vector<64x64xf32>
    %14 = arith.subf %10, %13 : vector<64x64xf32>
    %15 = math.exp %14 : vector<64x64xf32>
    %cst_12 = arith.constant dense<0.000000e+00> : vector<64xf32>
    %16 = vector.multi_reduction <add>, %15, %cst_12 [1] : vector<64x64xf32> to vector<64xf32>
    %17 = vector.shape_cast %16 : vector<64xf32> to vector<64x1xf32>
    %18 = tpu.reciprocal %17 {approx = true} : vector<64x1xf32> -> vector<64x1xf32>
    %cst_13 = arith.constant 0.176776692 : f32
    %19 = vector.broadcast %cst_13 : f32 to vector<64x1xf32>
    %20 = arith.mulf %18, %19 : vector<64x1xf32>
    %21 = vector.broadcast %20 : vector<64x1xf32> to vector<64x64xf32>
    %22 = arith.mulf %15, %21 : vector<64x64xf32>
    %cst_14 = arith.constant dense<0.000000e+00> : vector<32x64xf32>
    %23 = tpu.matmul %8, %22, %cst_14 {dimension_numbers = #tpu.dot_dimension_numbers<[1], [1], [0], [0], [0, 0, 1, 0], [], []>} : vector<32x64xf32>, vector<64x64xf32>, vector<32x64xf32> -> vector<32x64xf32>
    %24 = arith.addf %5, %23 : vector<32x64xf32>
    %c0_15 = arith.constant 0 : index
    %c0_16 = arith.constant 0 : index
    %c0_17 = arith.constant 0 : index
    %25 = vector.load %arg5[%c0_15, %c0_16, %c0_17] : memref<1x32x64xf32, #tpu.memory_space<vmem>>, vector<1x32x64xf32>
    %26 = vector.shape_cast %25 : vector<1x32x64xf32> to vector<32x64xf32>
    %27 = vector.shape_cast %24 : vector<32x64xf32> to vector<1x32x64xf32>
    tpu.vector_store %arg5[%c0_15, %c0_16, %c0_17], %27 {strides = array<i32>} : memref<1x32x64xf32, #tpu.memory_space<vmem>>, vector<1x32x64xf32>,
    %c0_18 = arith.constant 0 : index
    %c0_19 = arith.constant 0 : index
    %c0_20 = arith.constant 0 : index
    %28 = vector.load %arg6[%c0_18, %c0_19, %c0_20] : memref<1x32x64xf32, #tpu.memory_space<vmem>>, vector<1x32x64xf32>
    %29 = vector.shape_cast %28 : vector<1x32x64xf32> to vector<32x64xf32>
    %30 = vector.shape_cast %9 : vector<32x64xf32> to vector<1x32x64xf32>
    tpu.vector_store %arg6[%c0_18, %c0_19, %c0_20], %30 {strides = array<i32>} : memref<1x32x64xf32, #tpu.memory_space<vmem>>, vector<1x32x64xf32>,
    %c0_21 = arith.constant 0 : index
    %c0_22 = arith.constant 0 : index
    %c0_23 = arith.constant 0 : index
    %31 = vector.load %arg7[%c0_21, %c0_22, %c0_23] : memref<1x32x64xf32, #tpu.memory_space<vmem>>, vector<1x32x64xf32>
    %32 = vector.shape_cast %31 : vector<1x32x64xf32> to vector<32x64xf32>
    %33 = vector.shape_cast %7 : vector<32x64xf32> to vector<1x32x64xf32>
    tpu.vector_store %arg7[%c0_21, %c0_22, %c0_23], %33 {strides = array<i32>} : memref<1x32x64xf32, #tpu.memory_space<vmem>>, vector<1x32x64xf32>,
    return
  }
  func.func @transform_0(%arg0: i32) -> (i32, i32, i32) {
    %c0_i32 = arith.constant 0 : i32
    %c0_i32_0 = arith.constant 0 : i32
    %c0_i32_1 = arith.constant 0 : i32
    return %arg0, %c0_i32, %c0_i32_0 : i32, i32, i32
  }
  func.func @transform_1(%arg0: i32) -> (i32, i32, i32) {
    %c0_i32 = arith.constant 0 : i32
    %c0_i32_0 = arith.constant 0 : i32
    %c0_i32_1 = arith.constant 0 : i32
    return %arg0, %c0_i32, %c0_i32_0 : i32, i32, i32
  }
  func.func @transform_2(%arg0: i32) -> (i32, i32) {
    %c0_i32 = arith.constant 0 : i32
    %c0_i32_0 = arith.constant 0 : i32
    %c0_i32_1 = arith.constant 0 : i32
    return %c0_i32, %c0_i32_0 : i32, i32
  }
  func.func @transform_3(%arg0: i32) -> (i32, i32) {
    %c0_i32 = arith.constant 0 : i32
    %c0_i32_0 = arith.constant 0 : i32
    %c0_i32_1 = arith.constant 0 : i32
    return %c0_i32, %c0_i32_0 : i32, i32
  }
  func.func @transform_4(%arg0: i32) -> (i32, i32, i32) {
    %c0_i32 = arith.constant 0 : i32
    %c0_i32_0 = arith.constant 0 : i32
    %c0_i32_1 = arith.constant 0 : i32
    return %arg0, %c0_i32, %c0_i32_0 : i32, i32, i32
  }
  func.func @transform_5(%arg0: i32) -> (i32, i32, i32) {
    %c0_i32 = arith.constant 0 : i32
    %c0_i32_0 = arith.constant 0 : i32
    %c0_i32_1 = arith.constant 0 : i32
    return %arg0, %c0_i32, %c0_i32_0 : i32, i32, i32
  }
  func.func @transform_6(%arg0: i32) -> (i32, i32, i32) {
    %c0_i32 = arith.constant 0 : i32
    %c0_i32_0 = arith.constant 0 : i32
    %c0_i32_1 = arith.constant 0 : i32
    return %arg0, %c0_i32, %c0_i32_0 : i32, i32, i32
  }
}

</mosaic_0001>

<bundles_post_ra>
// kernel: tpu_custom_call.1
= control target key start
LH: loop header
LB: loop body
LE: loop exit
PB: predicated region body
PF: predicated region fallthrough
CT: control target
= control target key end

     0   :  { %s1995_s0 = inlined_call_operand.vmem [shape: f32[2,32,64], index: 0, kind: input, shape index: {}]   ;;  %s1996_s1 = inlined_call_operand.hbm [shape: f32[2,32,64], index: 1, kind: input, shape index: {}]   ;;  %s1997_s2 = inlined_call_operand.vmem [shape: f32[64,32], index: 2, kind: input, shape index: {}]   ;;  %s1998_s3 = inlined_call_operand.vmem [shape: f32[32,32], index: 3, kind: input, shape index: {}]   ;;  %s1999_s4 = inlined_call_operand.hbm [shape: f32[2,32,64], index: 4, kind: output, shape index: {0}]   ;;  %s2000_s5 = inlined_call_operand.hbm [shape: f32[2,32,64], index: 5, kind: output, shape index: {1}]   ;;  %s2001_s6 = inlined_call_operand.hbm [shape: f32[2,32,64], index: 6, kind: output, shape index: {2}]  }
   0x1   :  { %2007 = sst [smem:[#allocation12_spill]] %s1995_s0 }
   0x2   :  { %12 = vsyncpa [#allocation3], 0 }
   0x3   :  { %14 = vsyncpa [#allocation3 + $0x1], 0 }
   0x4   :  { %15 = vsyncpa [#allocation4], 0 }
   0x5   :  { %17 = vsyncpa [#allocation4 + $0x1], 0 }
   0x6   :  { %18 = vsyncpa [#allocation7], 0 }
   0x7   :  { %20 = vsyncpa [#allocation7 + $0x1], 0  ;;  %s1619_s21 = smov 0   ;;  %s1621_s22 = smov 0  }
   0x8   :  { %s1623_s23 = smov 0   ;;  %s1625_s24 = smov 0  }
   0x9 LB: > { %s1640_s25 = sadd.s32 4294967295, %s1574_s24   ;;  %s2004_s26 = sadd.s32 4294967294, %s1574_s24   ;;  %s1574_s24 = sphi %s1625_s24, %s2023_s24   ;;  %s1570_s23 = sphi %s1623_s23, %s2022_s23   ;;  %s1566_s22 = sphi %s1621_s22, %s2021_s22   ;;  %s1562_s21 = sphi %s1619_s21, %s2020_s21  }
   0xa   : > { %s1644_s27 = sadd.s32 1, %s1574_s24   ;;  %s59_s28 = sadd.s32 1, %s1570_s23 }
   0xb   : > { %s56_s29 = ssub.s32 %s1574_s24, %s1644_s27  ;;  %p66_p0 = scmp.ne.s32.totalorder %s1570_s23, %s1566_s22 }
   0xc   : > { %p57_p1 = scmp.eq.s32.totalorder %s56_s29, 0  ;;  %p67_p2 = scmp.eq.s32.totalorder %s1574_s24, 0 }
   0xd   : > { %p72_p3 = scmp.ne.s32.totalorder %s1566_s22, %s1562_s21  ;;  %p73_p4 = scmp.eq.s32.totalorder %s1640_s25, 0 }
   0xe   : > { %s1656_s30 = scalar_select %p57_p1, %s1570_s23, %s59_s28  }
   0xf   : > { %p1658_p5 = por %p67_p2, %p66_p0  ;;  %p1662_p6 = por %p73_p4, %p72_p3 }
  0x10   : > { %p138_p7 = scmp.eq.s32.totalorder %s1640_s25, 1  ;;  %p144_p8 = scmp.eq.s32.totalorder %s2004_s26, 1 }
  0x11   : > { %s2009_s8 = scalar_select %p1662_p6, 1, 0 }
  0x12   : > { %p1355_p10 = scmp.lt.s32.totalorder %s1574_s24, 2  ;;  %p1671_p11 = por %p138_p7, %p66_p0 }
  0x13   : > { %p1675_p12 = por %p144_p8, %p72_p3  ;;  %s230_s11 = sand.u32 1, %s1570_s23  }
  0x14   : > { %s2010_s9 = scalar_select %p1671_p11, 1, 0 }
  0x15   : > { %s2011_s10 = scalar_select %p1675_p12, 1, 0 }
  0x16   : > { %s1208_s12 = sshll.u32 %s1574_s24, 9  ;;  %s1155_s13 = sshll.u32 %s230_s11, 5 }
  0x17   : > { %s1684_s16 = scalar_lea.hbm %s1996_s1, %s1208_s12  ;;  %s234_s17 = scalar_lea.vmem [#allocation2], %s1155_s13 }
  0x18   : > { %s241_s18 = sshll.u32 %s234_s17, 4  ;;  %p1688_p13 = pnand %p1355_p10, %p1658_p5  ;;  %s1692_s18 = int_to_ptr.vmem [resolvable:$true] %s241_s18 }
  0x19   : > { %s1694_s20 = scalar_lea.sflag [#allocation3], %s230_s11  ;;  %s1426_s28 = scalar_lea.hbm %s1684_s16, 512 }
  0x1a   : > { %p1427_p0 = scmp.ne.s32.totalorder %s1684_s16, %s1426_s28  ;;  %p1428_p1 = pneg %p1688_p13 }
  0x1b   : > { %s1431_s13 = scalar_lea.hbm %s1996_s1, 1024  ;;  %p1432_p4 = scmp.lt.s32.totalorder %s1684_s16, %s1996_s1 }
  0x1c   : > { %p1429_p2 = pnand %p1428_p1, %p1427_p0  ;;  %p1433_p5 = scmp.lt.s32.totalorder %s1431_s13, %s1426_s28 }
  0x1e   : > { %p1430_p3 = pneg %p1429_p2  ;;  %p1434_p7 = por %p1433_p5, %p1432_p4 }
  0x20   : > { %p1435_p8 = pnand %p1434_p7, %p1430_p3 }
  0x22   : > { %1438 = shalt.err (!%p1435_p8)
}
  0x23   : > { %s1439_s11 = scalar_lea.vmem %s1692_s18, 512  ;;  %s1576_s15 = smov [#allocation2]  }
  0x24   : > { %p1440_p10 = scmp.ne.s32.totalorder %s1692_s18, %s1439_s11  ;;  %s1444_s17 = sshll.u32 %s1576_s15, 4  ;;  %s1445_s17 = int_to_ptr.vmem [resolvable:$false] %s1444_s17 }
  0x25   : > { %s1446_s29 = scalar_lea.vmem %s1445_s17, 1024  ;;  %p1447_p2 = scmp.lt.s32.totalorder %s1692_s18, %s1445_s17 }
  0x26   : > { %p1442_p9 = pnand %p1440_p10, %p1428_p1  ;;  %p1448_p12 = scmp.lt.s32.totalorder %s1446_s29, %s1439_s11 }
  0x28   : > { %p1443_p0 = pneg %p1442_p9  ;;  %p1449_p11 = por %p1448_p12, %p1447_p2 }
  0x2a   : > { %p1450_p6 = pnand %p1449_p11, %p1443_p0 }
  0x2c   : > { %1453 = shalt.err (!%p1450_p6)
}
  0x2d   : > { %s1577_s28 = smov 128   ;;  %s1578_s12 = smov 8  }
  0x2e   : > { %1344 = dma.hbm_to_vmem [thread:$0]  (!%p1688_p13), %s1684_s16, 512, %s1692_s18, %s1694_s20, %s1577_s28, %s1577_s28, %s1578_s12  }
  0x2f   : > { %p1158_p9 = scmp.ge.s32.totalorder %s1574_s24, 1  ;;  %p249_p1 = scmp.lt.s32.totalorder %s1574_s24, 3 }
  0x31   : > { %p250_p3 = pnand %p1158_p9, %p249_p1 }
  0x32   : > { %s1718_s13 = sand.u32 (!%p250_p3), 1, %s1566_s22   ;;  %p2013_p6 = scmp.ne.s32.totalorder (!%p250_p3), %s2009_s8, 0 }
  0x33   : > { %253 = sbr.rel (%p250_p3) target bundleno = 1167 (0x48f), region = 36  ;;  %s1721_s7 = sshll.u32 (!%p250_p3), %s1718_s13, 5 }
  0x34   : > { %s256_s14 = scalar_lea.sflag (!%p250_p3), [#allocation3], %s1718_s13  ;;  %s259_s11 = scalar_lea.vmem (!%p250_p3), [#allocation2], %s1721_s7 }
  0x38   : > { %1549 = dma.done.wait (%p2013_p6), %s256_s14, 512  }
  0x39   : > { %1551 = vsyncadd (%p2013_p6), %s256_s14, 4294966784  ;;  %p303_p11 = scmp.lt.s32.totalorder %s1640_s25, 1  ;;  %vm328_vm0 = vcmask 261120   ;;  %s2014_s0 = sld [smem:[#allocation12_spill]]  ;;  %v1734_v0 = vld [vmem:[%s259_s11 + $0x18] sm:$0xff]  ;;  %v1736_v1 = vld [vmem:[%s259_s11 + $0x10] sm:$0xff] }
  0x3a   : > { %1277 = vmatprep.subr.mxu1 %v1734_v0  ;;  %v316_v2 = vld [vmem:[%s1998_s3] sm:$0xff]  ;;  %v1743_v3 = vld [vmem:[%s259_s11 + $0x8] sm:$0xff]  ;;  %v318_v10 = vld [vmem:[%s1998_s3 + $0x10] sm:$0xff]  ;;  %vm716_vm1 = vcmask 523264   ;;  %s1783_s12 = scalar_lea.vmem [#allocation6], %s1721_s7  ;;  %s1790_s14 = scalar_lea.vmem [#allocation8], %s1721_s7 }
  0x3b   : > { %s304_s16 = scalar_select %p303_p11, %s1640_s25, 1  ;;  %1278 = vmatpush3.msra.mxu1 %v1734_v0  ;;  %1285 = vmatprep.mubr.msk.f32.mxu1 %vm328_vm0, %v316_v2  ;;  %v1748_v6 = vld [vmem:[%s259_s11] sm:$0xff]  ;;  %v317_v8 = vld [vmem:[%s1998_s3 + $0x8] sm:$0xff]  ;;  %v319_v13 = vld [vmem:[%s1998_s3 + $0x18] sm:$0xff] }
  0x3c   : > { %1279 = vmatprep.subr.mxu1 %v1736_v1  ;;  %v308_v11 = vld [vmem:[%s1997_s2] sm:$0xff]  ;;  %v309_v12 = vld [vmem:[%s1997_s2 + $0x8] sm:$0xff]  ;;  %v310_v14 = vld [vmem:[%s1997_s2 + $0x10] sm:$0xff]  ;;  %s990_s8 = sshll.u32 %s1783_s12, 4  ;;  %s1006_s28 = sshll.u32 %s1790_s14, 4  ;;  %s1870_s8 = int_to_ptr.vmem [resolvable:$true] %s990_s8  ;;  %s1872_s28 = int_to_ptr.vmem [resolvable:$true] %s1006_s28 }
  0x3d   : > { %s1209_s18 = sshll.u32 %s304_s16, 5  ;;  %1280 = vmatpush3.msra.mxu1 %v1736_v1  ;;  %1265 = vmatprep.mubr.msk.f32.mxu0 %vm328_vm0, %v308_v11  ;;  %v311_v15 = vld [vmem:[%s1997_s2 + $0x18] sm:$0xff]  ;;  %v312_v46 = vld [vmem:[%s1997_s2 + $0x20] sm:$0xff]  ;;  %v313_v47 = vld [vmem:[%s1997_s2 + $0x28] sm:$0xff]  ;;  %s955_s11 = sand.u32 1, %s1640_s25  }
  0x3e   : > { %1281 = vmatprep.subr.mxu1 %v1743_v3  ;;  %v314_v49 = vld [vmem:[%s1997_s2 + $0x30] sm:$0xff]  ;;  %v315_v50 = vld [vmem:[%s1997_s2 + $0x38] sm:$0xff]  ;;  %s1876_s16 = sshll.u32 %s1640_s25, 9  ;;  %p2015_p13 = scmp.ne.s32.totalorder %s2010_s9, 0 }
  0x3f   : > { %s307_s15 = scalar_lea.vmem %s2014_s0, %s1209_s18  ;;  %1282 = vmatpush3.msra.mxu1 %v1743_v3  ;;  %s1882_s20 = scalar_lea.hbm %s2000_s5, %s1876_s16 }
  0x40   : > { %v323_v4 = vld [vmem:[%s307_s15 + $0x18] sm:$0xff]  ;;  %v322_v5 = vld [vmem:[%s307_s15 + $0x10] sm:$0xff]  ;;  %v321_v7 = vld [vmem:[%s307_s15 + $0x8] sm:$0xff]  ;;  %1283 = vmatprep.subr.mxu1 %v1748_v6 }
  0x41   : > { %1257 = vmatprep.subr.mxu0 %v323_v4  ;;  %v320_v9 = vld [vmem:[%s307_s15] sm:$0xff]  ;;  %1284 = vmatpush3.msra.mxu1 %v1748_v6  ;;  %s1884_s15 = scalar_lea.sflag [#allocation7], %s955_s11 }
  0x42   : > { %1258 = vmatpush3.msra.mxu0 %v323_v4  ;;  %1286 = vmatmul.mubr.msk.f32.vlgmr.msra.gmra.mxu1 %vm328_vm0, %v317_v8 }
  0x43   : > { %1259 = vmatprep.subr.mxu0 %v322_v5  ;;  %1288 = vmatprep.mubr.msk.f32.mxu1 %vm328_vm0, %v318_v10 }
  0x44   : > { %1260 = vmatpush3.msra.mxu0 %v322_v5 }
  0x45   : > { %1261 = vmatprep.subr.mxu0 %v321_v7 }
  0x46   : > { %1262 = vmatpush3.msra.mxu0 %v321_v7  ;;  %1289 = vmatmul.mubr.msk.f32.gmra.mxu1 %vm328_vm0, %v319_v13 }
  0x47   : > { %1263 = vmatprep.subr.mxu0 %v320_v9 }
  0x48   : > { %1264 = vmatpush3.msra.mxu0 %v320_v9 }
  0x49   : > { %1266 = vmatmul.mubr.msk.f32.vlgmr.msra.gmra.mxu0 %vm328_vm0, %v309_v12 }
  0x4a   : > { %1268 = vmatprep.mubr.msk.f32.mxu0 %vm328_vm0, %v310_v14 }
  0x4d   : > { %1269 = vmatmul.mubr.msk.f32.gmra.mxu0 %vm328_vm0, %v311_v15 }
  0x4e   : > { %1271 = vmatprep.mubr.msk.f32.mxu0 %vm328_vm0, %v312_v46 }
  0x51   : > { %1272 = vmatmul.mubr.msk.f32.gmra.mxu0 %vm328_vm0, %v313_v47 }
  0x52   : > { %1274 = vmatprep.mubr.msk.f32.mxu0 %vm328_vm0, %v314_v49 }
  0x55   : > { %1275 = vmatmul.mubr.msk.f32.gmra.mxu0 %vm328_vm0, %v315_v50 }
 0x102   : > { %v1287_v16 = vpop.f32.mrf.mxu1 }
 0x103   : > { %943 = vst.msk [vmem:[%s1783_s12 + $0x8] sm:$0xff] %vm716_vm1, %v1287_v16 }
 0x104   : > { %v536_v17 = vpop.f32.mrf.mxu1 }
 0x105   : > { %942 = vst.msk [vmem:[%s1783_s12] sm:$0xff] %vm716_vm1, %v536_v17  ;;  %555 = vxpose.xlu0.b32.start [1/4] (short) (narrow) %v536_v17, 64 }
 0x106   : > { %v1290_v19 = vpop.f32.mrf.mxu1 }
 0x107   : > { %945 = vst.msk [vmem:[%s1783_s12 + $0x18] sm:$0xff] %vm716_vm1, %v1290_v19 }
 0x108   : > { %v546_v21 = vpop.f32.mrf.mxu1 }
 0x109   : > { %v1267_v18 = vpop.f32.mrf.mxu0  ;;  %556 = vxpose.xlu0.b32.cont [2/4] (short) (narrow) %v1287_v16, 64  ;;  %944 = vst.msk [vmem:[%s1783_s12 + $0x10] sm:$0xff] %vm716_vm1, %v546_v21  ;;  %s1454_s12 = scalar_lea.vmem %s1870_s8, 512 }
 0x10a   : > { %947 = vst.msk [vmem:[%s1790_s14 + $0x8] sm:$0xff] %vm716_vm1, %v1267_v18  ;;  %p1455_p12 = scmp.ne.s32.totalorder %s1870_s8, %s1454_s12 }
 0x10b   : > { %v419_v20 = vpop.f32.mrf.mxu0 }
 0x10c   : > { %946 = vst.msk [vmem:[%s1790_s14] sm:$0xff] %vm716_vm1, %v419_v20  ;;  %p1456_p4 = pnand %p1455_p12, %p2015_p13 }
 0x10d   : > { %v1270_v22 = vpop.f32.mrf.mxu0  ;;  %557 = vxpose.xlu0.b32.cont [3/4] (short) (narrow) %v546_v21, 64 }
 0x10e   : > { %949 = vst.msk [vmem:[%s1790_s14 + $0x18] sm:$0xff] %vm716_vm1, %v1270_v22  ;;  %1291 = vmatprep.subr.mxu1 %v1270_v22  ;;  %p1457_p5 = pneg %p1456_p4 }
 0x10f   : > { %v429_v23 = vpop.f32.mrf.mxu0  ;;  %1292 = vmatpush3.msra.mxu1 %v1270_v22 }
 0x110   : > { %948 = vst.msk [vmem:[%s1790_s14 + $0x10] sm:$0xff] %vm716_vm1, %v429_v23  ;;  %1293 = vmatprep.subr.mxu1 %v429_v23  ;;  %s1579_s14 = smov [#allocation6]  }
 0x111   : > { %1294 = vmatpush3.msra.mxu1 %v429_v23  ;;  %558 = vxpose.xlu0.b32.end [4/4] (short) (narrow) %v1290_v19, 64  ;;  %s1458_s17 = sshll.u32 %s1579_s14, 4  ;;  %s1459_s17 = int_to_ptr.vmem [resolvable:$false] %s1458_s17 }
 0x112   : > { %1295 = vmatprep.subr.mxu1 %v1267_v18  ;;  %s1460_s29 = scalar_lea.vmem %s1459_s17, 1024  ;;  %p1461_p7 = scmp.lt.s32.totalorder %s1870_s8, %s1459_s17 }
 0x113   : > { %1296 = vmatpush3.msra.mxu1 %v1267_v18  ;;  %p1462_p8 = scmp.lt.s32.totalorder %s1460_s29, %s1454_s12 }
 0x114   : > { %1297 = vmatprep.subr.mxu1 %v419_v20 }
 0x115   : > { %1298 = vmatpush3.msra.mxu1 %v419_v20  ;;  %p1463_p10 = por %p1462_p8, %p1461_p7 }
 0x117   : > { %p1464_p0 = pnand %p1463_p10, %p1457_p5 }
 0x181   : > { %v571_v24 = vpop.trf.xlu0 }
 0x182   : > { %1299 = vmatprep.mubr.msk.f32.mxu1 %vm328_vm0, %v571_v24 }
 0x185   : > { %v572_v25 = vpop.trf.xlu0 }
 0x186   : > { %1300 = vmatmul.mubr.msk.f32.vlgmr.msra.gmra.mxu1 %vm328_vm0, %v572_v25 }
 0x189   : > { %v573_v26 = vpop.trf.xlu0 }
 0x18a   : > { %1302 = vmatprep.mubr.msk.f32.mxu1 %vm328_vm0, %v573_v26 }
 0x18d   : > { %v574_v27 = vpop.trf.xlu0 }
 0x18e   : > { %1303 = vmatmul.mubr.msk.f32.gmra.mxu1 %vm328_vm0, %v574_v27 }
 0x191   : > { %v575_v28 = vpop.trf.xlu0 }
 0x192   : > { %1305 = vmatprep.mubr.msk.f32.mxu1 %vm328_vm0, %v575_v28 }
 0x195   : > { %v576_v29 = vpop.trf.xlu0 }
 0x196   : > { %1306 = vmatmul.mubr.msk.f32.gmra.mxu1 %vm328_vm0, %v576_v29 }
 0x199   : > { %v577_v30 = vpop.trf.xlu0 }
 0x19a   : > { %1308 = vmatprep.mubr.msk.f32.mxu1 %vm328_vm0, %v577_v30 }
 0x19d   : > { %v578_v31 = vpop.trf.xlu0 }
 0x19e   : > { %1309 = vmatmul.mubr.msk.f32.gmra.mxu1 %vm328_vm0, %v578_v31 }
 0x246   : > { %v1301_v32 = vpop.f32.mrf.mxu1 }
 0x247   : > { %v720_v48 = vsel %vm716_vm1, %v1301_v32, -inf }
 0x248   : > { %v1812_v33 = vpop.f32.mrf.mxu1 }
 0x249   : > { %v717_v51 = vsel %vm716_vm1, %v1812_v33, -inf }
 0x24e   : > { %v1304_v34 = vpop.f32.mrf.mxu1 }
 0x24f   : > { %v726_v35 = vsel %vm716_vm1, %v1304_v34, -inf }
 0x250   : > { %727 = vmax.xlane.f32.xlu0 %v726_v35  ;;  %v687_v36 = vpop.f32.mrf.mxu1 }
 0x251   : > { %v723_v45 = vsel %vm716_vm1, %v687_v36, -inf }
 0x256   : > { %v1307_v37 = vpop.f32.mrf.mxu1 }
 0x257   : > { %v732_v43 = vsel %vm716_vm1, %v1307_v37, -inf }
 0x258   : > { %v697_v38 = vpop.f32.mrf.mxu1 }
 0x259   : > { %v729_v44 = vsel %vm716_vm1, %v697_v38, -inf }
 0x25e   : > { %v1310_v39 = vpop.f32.mrf.mxu1 }
 0x25f   : > { %v738_v40 = vsel %vm716_vm1, %v1310_v39, -inf }
 0x260   : > { %739 = vmax.xlane.f32.xlu1 %v738_v40  ;;  %v707_v41 = vpop.f32.mrf.mxu1 }
 0x261   : > { %v735_v42 = vsel %vm716_vm1, %v707_v41, -inf }
 0x264   : > { %736 = vmax.xlane.f32.xlu1 %v735_v42 }
 0x268   : > { %733 = vmax.xlane.f32.xlu1 %v732_v43 }
 0x26c   : > { %730 = vmax.xlane.f32.xlu1 %v729_v44 }
 0x270   : > { %724 = vmax.xlane.f32.xlu1 %v723_v45 }
 0x274   : > { %721 = vmax.xlane.f32.xlu1 %v720_v48 }
 0x278   : > { %718 = vmax.xlane.f32.xlu1 %v717_v51 }
 0x2d9   : > { %v728_v58 = vpop.xlane.xlu0 %727 }
 0x2da   : > { %v744_v61 = vsub.f32 %v1304_v34, %v728_v58 }
 0x2dc   : > { %v755_v4 = vmul.f32 1.442695, %v744_v61 }
 0x2e9   : > { %v740_v52 = vpop.xlane.xlu1 %739 }
 0x2ea   : > { %v748_v53 = vsub.f32 %v1310_v39, %v740_v52 }
 0x2ec   : > { %v763_v54 = vmul.f32 1.442695, %v748_v53 }
 0x2ed   : > { %v737_v55 = vpop.xlane.xlu1 %736 }
 0x2ee   : > { %1394 = vpow2.f32 %v763_v54  ;;  %v747_v56 = vsub.f32 %v707_v41, %v737_v55 }
 0x2f0   : > { %v761_v57 = vmul.f32 1.442695, %v747_v56 }
 0x2f1   : > { %v734_v59 = vpop.xlane.xlu1 %733 }
 0x2f2   : > { %1396 = vpow2.f32 %v761_v57  ;;  %v746_v60 = vsub.f32 %v1307_v37, %v734_v59 }
 0x2f4   : > { %v759_v62 = vmul.f32 1.442695, %v746_v60 }
 0x2f5   : > { %v731_v63 = vpop.xlane.xlu1 %730 }
 0x2f6   : > { %1398 = vpow2.f32 %v759_v62  ;;  %v745_v2 = vsub.f32 %v697_v38, %v731_v63 }
 0x2f8   : > { %v757_v5 = vmul.f32 1.442695, %v745_v2 }
 0x2f9   : > { %v725_v7 = vpop.xlane.xlu1 %724 }
 0x2fa   : > { %1400 = vpow2.f32 %v757_v5  ;;  %v743_v8 = vsub.f32 %v687_v36, %v725_v7 }
 0x2fb   : > { %v1395_v9 = vpop.eup %1394  ;;  %1402 = vpow2.f32 %v755_v4 }
 0x2fc   : > { %v753_v10 = vmul.f32 1.442695, %v743_v8  ;;  %v786_v11 = vsel %vm716_vm1, %v1395_v9, 0.0 }
 0x2fd   : > { %787 = vadd.xlane.f32.xlu1 %v786_v11  ;;  %v722_v12 = vpop.xlane.xlu1 %721 }
 0x2fe   : > { %v742_v13 = vsub.f32 %v1301_v32, %v722_v12  ;;  %1404 = vpow2.f32 %v753_v10  ;;  %v1273_v32 = vpop.f32.mrf.mxu0 }
 0x2ff   : > { %v1397_v14 = vpop.eup %1396 }
 0x300   : > { %v751_v15 = vmul.f32 1.442695, %v742_v13  ;;  %v783_v16 = vsel %vm716_vm1, %v1397_v14, 0.0 }
 0x301   : > { %784 = vadd.xlane.f32.xlu1 %v783_v16  ;;  %v719_v17 = vpop.xlane.xlu1 %718 }
 0x302   : > { %v741_v18 = vsub.f32 %v1812_v33, %v719_v17  ;;  %1406 = vpow2.f32 %v751_v15  ;;  %v439_v33 = vpop.f32.mrf.mxu0 }
 0x303   : > { %v1399_v19 = vpop.eup %1398  ;;  %1327 = vmatprep.mubr.msk.f32.mxu0 %vm716_vm1, %v439_v33 }
 0x304   : > { %v749_v20 = vmul.f32 1.442695, %v741_v18  ;;  %v780_v21 = vsel %vm716_vm1, %v1399_v19, 0.0  ;;  %v1276_v5 = vpop.f32.mrf.mxu0 }
 0x305   : > { %781 = vadd.xlane.f32.xlu1 %v780_v21 }
 0x306   : > { %1408 = vpow2.f32 %v749_v20  ;;  %v449_v7 = vpop.f32.mrf.mxu0 }
 0x307   : > { %v1401_v22 = vpop.eup %1400 }
 0x308   : > { %v777_v23 = vsel %vm716_vm1, %v1401_v22, 0.0  ;;  %v1403_v24 = vpop.eup %1402 }
 0x309   : > { %778 = vadd.xlane.f32.xlu1 %v777_v23  ;;  %v774_v25 = vsel %vm716_vm1, %v1403_v24, 0.0 }
 0x30b   : > { %v1405_v26 = vpop.eup %1404 }
 0x30c   : > { %v771_v27 = vsel %vm716_vm1, %v1405_v26, 0.0 }
 0x30d   : > { %775 = vadd.xlane.f32.xlu1 %v774_v25 }
 0x30f   : > { %v1407_v28 = vpop.eup %1406 }
 0x310   : > { %v768_v29 = vsel %vm716_vm1, %v1407_v28, 0.0 }
 0x311   : > { %772 = vadd.xlane.f32.xlu1 %v771_v27 }
 0x313   : > { %v1409_v30 = vpop.eup %1408 }
 0x314   : > { %v765_v31 = vsel %vm716_vm1, %v1409_v30, 0.0 }
 0x315   : > { %769 = vadd.xlane.f32.xlu1 %v768_v29 }
 0x319   : > { %766 = vadd.xlane.f32.xlu1 %v765_v31 }
 0x386   : > { %v788_v34 = vpop.xlane.xlu1 %787 }
 0x387   : > { %1410 = vrcp.f32 %v788_v34 }
 0x38a   : > { %v785_v35 = vpop.xlane.xlu1 %784 }
 0x38b   : > { %1412 = vrcp.f32 %v785_v35 }
 0x38e   : > { %v782_v36 = vpop.xlane.xlu1 %781 }
 0x38f   : > { %1414 = vrcp.f32 %v782_v36 }
 0x392   : > { %v779_v37 = vpop.xlane.xlu1 %778 }
 0x393   : > { %1416 = vrcp.f32 %v779_v37 }
 0x394   : > { %v1411_v38 = vpop.eup %1410 }
 0x395   : > { %v804_v39 = vmul.f32 0.17677669, %v1411_v38 }
 0x396   : > { %v776_v40 = vpop.xlane.xlu1 %775 }
 0x397   : > { %v812_v41 = vmul.f32 %v1395_v9, %v804_v39  ;;  %1418 = vrcp.f32 %v776_v40 }
 0x398   : > { %v1413_v42 = vpop.eup %1412 }
 0x399   : > { %v803_v43 = vmul.f32 0.17677669, %v1413_v42  ;;  %1311 = vmatprep.subr.msk.mxu0 %vm716_vm1, %v812_v41 }
 0x39a   : > { %1312 = vmatpush3.xpose.msk.msra.mxu0 %vm716_vm1, %v812_v41  ;;  %v773_v44 = vpop.xlane.xlu1 %772 }
 0x39b   : > { %v811_v45 = vmul.f32 %v1397_v14, %v803_v43  ;;  %1420 = vrcp.f32 %v773_v44 }
 0x39c   : > { %v1415_v46 = vpop.eup %1414 }
 0x39d   : > { %v802_v47 = vmul.f32 0.17677669, %v1415_v46  ;;  %1313 = vmatprep.subr.msk.mxu0 %vm716_vm1, %v811_v45 }
 0x39e   : > { %1314 = vmatpush3.xpose.msk.msra.mxu0 %vm716_vm1, %v811_v45  ;;  %v770_v48 = vpop.xlane.xlu1 %769 }
 0x39f   : > { %v810_v49 = vmul.f32 %v1399_v19, %v802_v47  ;;  %1422 = vrcp.f32 %v770_v48 }
 0x3a0   : > { %v1417_v50 = vpop.eup %1416 }
 0x3a1   : > { %v801_v51 = vmul.f32 0.17677669, %v1417_v50  ;;  %1315 = vmatprep.subr.msk.mxu0 %vm716_vm1, %v810_v49 }
 0x3a2   : > { %1316 = vmatpush3.xpose.msk.msra.mxu0 %vm716_vm1, %v810_v49  ;;  %v767_v52 = vpop.xlane.xlu1 %766 }
 0x3a3   : > { %v809_v53 = vmul.f32 %v1401_v22, %v801_v51  ;;  %1424 = vrcp.f32 %v767_v52 }
 0x3a4   : > { %v1419_v54 = vpop.eup %1418 }
 0x3a5   : > { %v800_v55 = vmul.f32 0.17677669, %v1419_v54  ;;  %1317 = vmatprep.subr.msk.mxu0 %vm716_vm1, %v809_v53 }
 0x3a6   : > { %1318 = vmatpush3.xpose.msk.msra.mxu0 %vm716_vm1, %v809_v53 }
 0x3a7   : > { %v808_v56 = vmul.f32 %v1403_v24, %v800_v55 }
 0x3a8   : > { %v1421_v57 = vpop.eup %1420 }
 0x3a9   : > { %v799_v58 = vmul.f32 0.17677669, %v1421_v57  ;;  %1319 = vmatprep.subr.msk.mxu0 %vm716_vm1, %v808_v56 }
 0x3aa   : > { %1320 = vmatpush3.xpose.msk.msra.mxu0 %vm716_vm1, %v808_v56 }
 0x3ab   : > { %v807_v59 = vmul.f32 %v1405_v26, %v799_v58 }
 0x3ac   : > { %v1423_v60 = vpop.eup %1422 }
 0x3ad   : > { %v798_v61 = vmul.f32 0.17677669, %v1423_v60  ;;  %1321 = vmatprep.subr.msk.mxu0 %vm716_vm1, %v807_v59 }
 0x3ae   : > { %1322 = vmatpush3.xpose.msk.msra.mxu0 %vm716_vm1, %v807_v59 }
 0x3af   : > { %v806_v62 = vmul.f32 %v1407_v28, %v798_v61 }
 0x3b0   : > { %v1425_v63 = vpop.eup %1424 }
 0x3b1   : > { %v797_v2 = vmul.f32 0.17677669, %v1425_v63  ;;  %1323 = vmatprep.subr.msk.mxu0 %vm716_vm1, %v806_v62 }
 0x3b2   : > { %1324 = vmatpush3.xpose.msk.msra.mxu0 %vm716_vm1, %v806_v62 }
 0x3b3   : > { %v805_v4 = vmul.f32 %v1409_v30, %v797_v2 }
 0x3b5   : > { %1325 = vmatprep.subr.msk.mxu0 %vm716_vm1, %v805_v4 }
 0x3b6   : > { %1326 = vmatpush3.xpose.msk.msra.mxu0 %vm716_vm1, %v805_v4 }
 0x3b9   : > { %1328 = vmatmul.mubr.msk.f32.vlgmr.msra.gmra.mxu0 %vm716_vm1, %v1273_v32 }
 0x3ba   : > { %1330 = vmatprep.mubr.msk.f32.mxu0 %vm716_vm1, %v449_v7 }
 0x3bd   : > { %1331 = vmatmul.mubr.msk.f32.gmra.mxu0 %vm716_vm1, %v1276_v5 }
 0x3be   : > { %1467 = shalt.err (!%p1464_p0)
}
 0x3bf   : > { %s1468_s25 = scalar_lea.hbm %s1882_s20, 512  ;;  %s1472_s19 = scalar_lea.hbm %s2000_s5, 1024 }
 0x3c0   : > { %p1469_p2 = scmp.ne.s32.totalorder %s1882_s20, %s1468_s25  ;;  %p1473_p3 = scmp.lt.s32.totalorder %s1882_s20, %s2000_s5 }
 0x3c1   : > { %p1474_p6 = scmp.lt.s32.totalorder %s1472_s19, %s1468_s25 }
 0x3c2   : > { %p1470_p9 = pnand %p1469_p2, %p2015_p13 }
 0x3c3   : > { %p1475_p11 = por %p1474_p6, %p1473_p3 }
 0x3c4   : > { %p1471_p1 = pneg %p1470_p9 }
 0x3c6   : > { %p1476_p12 = pnand %p1475_p11, %p1471_p1 }
 0x3c8   : > { %1479 = shalt.err (!%p1476_p12)
}
 0x3c9   : > { %s2005_s12 = smov 128   ;;  %s1581_s17 = smov 8  }
 0x3ca   : > { %1336 = dma.vmem_to_hbm [thread:$0]  (%p2015_p13), %s1870_s8, 512, %s1882_s20, %s1884_s15, %s2005_s12, %s2005_s12, %s1581_s17  }
 0x3cb   : > { %s1005_s25 = scalar_lea.hbm %s2001_s6, %s1876_s16  ;;  %s1480_s11 = scalar_lea.vmem %s1872_s28, 512 }
 0x3cc   : > { %p1481_p4 = scmp.ne.s32.totalorder %s1872_s28, %s1480_s11  ;;  %s1582_s18 = smov [#allocation8]  }
 0x3cd   : > { %s1484_s19 = sshll.u32 %s1582_s18, 4  ;;  %s1485_s19 = int_to_ptr.vmem [resolvable:$false] %s1484_s19 }
 0x3ce   : > { %p1482_p5 = pnand %p1481_p4, %p2015_p13  ;;  %s1486_s14 = scalar_lea.vmem %s1485_s19, 1024 }
 0x3cf   : > { %p1487_p8 = scmp.lt.s32.totalorder %s1872_s28, %s1485_s19  ;;  %p1488_p10 = scmp.lt.s32.totalorder %s1486_s14, %s1480_s11 }
 0x3d0   : > { %p1483_p7 = pneg %p1482_p5 }
 0x3d1   : > { %p1489_p0 = por %p1488_p10, %p1487_p8 }
 0x3d3   : > { %p1490_p2 = pnand %p1489_p0, %p1483_p7 }
 0x3d5   : > { %1493 = shalt.err (!%p1490_p2)
}
 0x3d6   : > { %s1494_s0 = scalar_lea.hbm %s1005_s25, 512  ;;  %s1498_s26 = scalar_lea.hbm %s2001_s6, 1024 }
 0x3d7   : > { %p1495_p9 = scmp.ne.s32.totalorder %s1005_s25, %s1494_s0  ;;  %p1499_p6 = scmp.lt.s32.totalorder %s1005_s25, %s2001_s6 }
 0x3d8   : > { %p1500_p11 = scmp.lt.s32.totalorder %s1498_s26, %s1494_s0 }
 0x3d9   : > { %p1496_p1 = pnand %p1495_p9, %p2015_p13 }
 0x3da   : > { %p1501_p12 = por %p1500_p11, %p1499_p6 }
 0x3db   : > { %p1497_p3 = pneg %p1496_p1 }
 0x3dd   : > { %p1502_p4 = pnand %p1501_p12, %p1497_p3 }
 0x3df   : > { %1505 = shalt.err (!%p1502_p4)
}
 0x3e0   : > { %s2016_s11 = smov 128   ;;  %s288_s12 = scalar_lea.vmem [#allocation5], %s1721_s7 }
 0x3e1   : > { %1337 = dma.vmem_to_hbm [thread:$0]  (%p2015_p13), %s1872_s28, 512, %s1005_s25, %s1884_s15, %s2016_s11, %s2016_s11, %s1581_s17  }
 0x3e2   : > { %s974_s0 = sshll.u32 %s288_s12, 4  ;;  %s1948_s15 = scalar_lea.hbm %s1999_s4, %s1876_s16  ;;  %s1940_s0 = int_to_ptr.vmem [resolvable:$true] %s974_s0 }
 0x3e3   : > { %s951_s25 = scalar_lea.sflag [#allocation4], %s1718_s13  ;;  %s1506_s18 = scalar_lea.vmem %s1940_s0, 512 }
 0x3e4   : > { %p1507_p5 = scmp.ne.s32.totalorder %s1940_s0, %s1506_s18  ;;  %s1583_s19 = smov [#allocation5]  }
 0x3e5   : > { %s1510_s14 = sshll.u32 %s1583_s19, 4  ;;  %s1511_s14 = int_to_ptr.vmem [resolvable:$false] %s1510_s14 }
 0x3e6   : > { %p1508_p7 = pnand %p1507_p5, %p2015_p13  ;;  %s1512_s8 = scalar_lea.vmem %s1511_s14, 1024 }
 0x3e7   : > { %p1513_p10 = scmp.lt.s32.totalorder %s1940_s0, %s1511_s14  ;;  %p1514_p0 = scmp.lt.s32.totalorder %s1512_s8, %s1506_s18 }
 0x3e8   : > { %p1509_p8 = pneg %p1508_p7 }
 0x3e9   : > { %p1515_p2 = por %p1514_p0, %p1513_p10 }
 0x3eb   : > { %p1516_p9 = pnand %p1515_p2, %p1509_p8 }
 0x479   : > { %v1329_v8 = vpop.f32.mrf.mxu0 }
 0x47a   : > { %v935_v9 = vadd.f32 %v1329_v8, %v1743_v3 }
 0x47b   : > { %v915_v10 = vpop.f32.mrf.mxu0 }
 0x47c   : > { %939 = vst.msk [vmem:[%s288_s12 + $0x8] sm:$0xff] %vm716_vm1, %v935_v9  ;;  %v934_v11 = vadd.f32 %v915_v10, %v1748_v6 }
 0x47d   : > { %v1332_v12 = vpop.f32.mrf.mxu0 }
 0x47e   : > { %938 = vst.msk [vmem:[%s288_s12] sm:$0xff] %vm716_vm1, %v934_v11  ;;  %v937_v13 = vadd.f32 %v1332_v12, %v1734_v0 }
 0x47f   : > { %v925_v14 = vpop.f32.mrf.mxu0 }
 0x480   : > { %941 = vst.msk [vmem:[%s288_s12 + $0x18] sm:$0xff] %vm716_vm1, %v937_v13  ;;  %v936_v3 = vadd.f32 %v925_v14, %v1736_v1 }
 0x482   : > { %940 = vst.msk [vmem:[%s288_s12 + $0x10] sm:$0xff] %vm716_vm1, %v936_v3 }
 0x483   : > { %1519 = shalt.err (!%p1516_p9)
}
 0x484   : > { %s1520_s16 = scalar_lea.hbm %s1948_s15, 512  ;;  %s1524_s26 = scalar_lea.hbm %s1999_s4, 1024 }
 0x485   : > { %p1521_p1 = scmp.ne.s32.totalorder %s1948_s15, %s1520_s16  ;;  %p1525_p11 = scmp.lt.s32.totalorder %s1948_s15, %s1999_s4 }
 0x486   : > { %p1526_p12 = scmp.lt.s32.totalorder %s1524_s26, %s1520_s16 }
 0x487   : > { %p1522_p3 = pnand %p1521_p1, %p2015_p13 }
 0x488   : > { %p1527_p4 = por %p1526_p12, %p1525_p11 }
 0x489   : > { %p1523_p6 = pneg %p1522_p3 }
 0x48b   : > { %p1528_p5 = pnand %p1527_p4, %p1523_p6 }
 0x48d   : > { %1531 = shalt.err (!%p1528_p5)
}
 0x48e   : > { %1335 = dma.vmem_to_hbm [thread:$0]  (%p2015_p13), %s1940_s0, 512, %s1948_s15, %s951_s25, %s2016_s11, %s2016_s11, %s1581_s17  }
 0x48f PF: > { %s1021_s7 = sand.u32 1, %s1562_s21   ;;  %p2017_p7 = scmp.ne.s32.totalorder %s2011_s10, 0 }
 0x490   : > { %p2018_p8 = scmp.ge.s32.totalorder %s1574_s24, 2  ;;  %s1022_s28 = scalar_lea.sflag [#allocation4], %s1021_s7 }
 0x492   : > { %p1346_p10 = pnand %p2018_p8, %p2017_p7 }
 0x494   : > { %p1347_p0 = pneg %p1346_p10 }
 0x496   : > { %1553 = dma.done.wait (%p1347_p0), %s1022_s28, 512  }
 0x497   : > { %1555 = vsyncadd (%p1347_p0), %s1022_s28, 4294966784  ;;  %s2019_s9 = sadd.s32 4294967294, %s1574_s24  }
 0x498   : > { %s1030_s18 = sand.u32 1, %s2019_s9  }
 0x499   : > { %s1031_s19 = scalar_lea.sflag [#allocation7], %s1030_s18 }
 0x49a   : > { %1557 = dma.done.wait (%p1347_p0), %s1031_s19, 1024  }
 0x49b   : > { %1559 = vsyncadd (%p1347_p0), %s1031_s19, 4294966272  ;;  %p23_p13 = scmp.ge.s32.totalorder %s1644_s27, 4   ;;  %s2020_s21 = smov %s1566_s22 }
 0x49c   : > { %s2021_s22 = smov %s1570_s23  ;;  %s2022_s23 = smov %s1656_s30 }
 0x49d   : > { %s2023_s24 = smov %s1644_s27  ;;  %25 = sbr.rel (!%p23_p13) target bundleno = 9 (0x9), region = 116 }
 0x4a2   :  { %1045 = vsyncpa [#allocation3], 1 }
 0x4a3   :  { %1047 = vsyncpa [#allocation3 + $0x1], 1 }
 0x4a4   :  { %1048 = vsyncpa [#allocation4], 1 }
 0x4a5   :  { %1050 = vsyncpa [#allocation4 + $0x1], 1 }
 0x4a6   :  { %1051 = vsyncpa [#allocation7], 1 }
 0x4a7   :  { %1053 = vsyncpa [#allocation7 + $0x1], 1 }

</bundles_post_ra>
